<compile_context>
chip_gen: v5e
topology: v5e:2x2
jax: 0.10.0
libtpu: 0.0.40
codegen_flags: <defaults>
</compile_context>

<pallas_src>
import jax
import jax.numpy as jnp
import numpy as np
from jax.experimental import pallas as pl
from jax.experimental.pallas import tpu as pltpu

# ---------------- small config (ModelArgs equivalent) ----------------
B, S = 2, 8                       # batch, seq_len
DIM = 128                         # args.dim
MULTIPLE_OF = 256                 # args.multiple_of
_h = int(2 * (4 * DIM) / 3)
HIDDEN = MULTIPLE_OF * ((_h + MULTIPLE_OF - 1) // MULTIPLE_OF)   # 512
# TODO(synk): args.ffn_dim_multiplier is None in this config; if set, fold it
# into the HIDDEN computation above exactly as the PyTorch module does.


# ---------------- Pallas kernel ----------------
def ffn_kernel(x_ref, w13_ref, w2_ref, o_ref):
    # x_ref:   (ROW_TILE, DIM)        float32 activations
    # w13_ref: (DIM, 2*HIDDEN)        bf16, [w1^T | w3^T] fused along lanes
    # w2_ref:  (HIDDEN, DIM)          bf16, w2^T
    x = x_ref[...]                                   # (R, DIM) f32
    xb = x.astype(jnp.bfloat16)

    # Single fused projection producing both gate (a1) and value (a3) paths.
    a13 = jnp.dot(xb, w13_ref[...],
                  preferred_element_type=jnp.float32)          # (R, 2*HIDDEN)
    a1 = a13[:, :HIDDEN]                                       # lane-aligned slice
    a3 = a13[:, HIDDEN:]

    # SiLU: a1 * sigmoid(a1); reciprocal runs on the EUP (approx is fine here).
    swish = a1 * pl.reciprocal(1.0 + jnp.exp(-a1), approx=True)

    h = (swish * a3).astype(jnp.bfloat16)                      # (R, HIDDEN)
    y = jnp.dot(h, w2_ref[...], preferred_element_type=jnp.float32)  # (R, DIM)
    o_ref[...] = y.astype(o_ref.dtype)


def feed_forward(x, w13T_bf16, w2T_bf16):
    """x: (B, S, DIM) f32.  Weights pre-transposed to (in, out) and cast to bf16."""
    b, s, d = x.shape
    n = b * s
    x2 = x.reshape(n, d)

    # Grid choice per review: one TensorCore on v5e/v6e -> single block (no grid
    # overhead); two TensorCores on v7x -> split rows into 2 parallel steps.
    kind = jax.devices()[0].device_kind.lower()
    n_cores = 2 if ("v7" in kind or "7x" in kind) else 1
    row_tile = max(8, n // n_cores)
    if n % row_tile != 0:
        row_tile = n                                   # fall back to one block
    grid = (n // row_tile,)

    out = pl.pallas_call(
        ffn_kernel,
        out_shape=jax.ShapeDtypeStruct((n, d), x.dtype),
        grid=grid,
        in_specs=[
            pl.BlockSpec((row_tile, d), lambda i: (i, 0)),          # activations
            pl.BlockSpec((d, 2 * HIDDEN), lambda i: (0, 0)),        # fused w1|w3 ^T
            pl.BlockSpec((HIDDEN, d), lambda i: (0, 0)),            # w2 ^T
        ],
        out_specs=pl.BlockSpec((row_tile, d), lambda i: (i, 0)),
        compiler_params=pltpu.CompilerParams(
            dimension_semantics=("parallel",)),
    )(x2, w13T_bf16, w2T_bf16)
    return out.reshape(b, s, d)


# ---------------- plain-JAX reference (mirrors the PyTorch forward, f32) ----------------
def feed_forward_ref(x, w1, w2, w3):
    a1 = x @ w1.T
    a3 = x @ w3.T
    return (jax.nn.silu(a1) * a3) @ w2.T


# ---------------- main ----------------
if __name__ == "__main__":
    key = jax.random.PRNGKey(0)
    k0, k1, k2, k3 = jax.random.split(key, 4)

    x = jax.random.normal(k0, (B, S, DIM), dtype=jnp.float32)

    # nn.Linear weights, PyTorch-style (out, in), deterministic init.
    scale = 0.05
    w1 = scale * jax.random.normal(k1, (HIDDEN, DIM), dtype=jnp.float32)
    w2 = scale * jax.random.normal(k2, (DIM, HIDDEN), dtype=jnp.float32)
    w3 = scale * jax.random.normal(k3, (HIDDEN, DIM), dtype=jnp.float32)

    # Kernel-side weights: transpose to (in, out), fuse w1|w3, cast to bf16.
    w13T = jnp.concatenate([w1.T, w3.T], axis=1).astype(jnp.bfloat16)  # (DIM, 2*HIDDEN)
    w2T = w2.T.astype(jnp.bfloat16)                                    # (HIDDEN, DIM)

    out = feed_forward(x, w13T, w2T)
    out = jax.block_until_ready(out)

    ref = feed_forward_ref(x, w1, w2, w3)
    # Relaxed tolerance because matmul operands are intentionally bf16.
    np.testing.assert_allclose(np.asarray(out), np.asarray(ref),
                               rtol=3e-2, atol=3e-2)

    print("KERNEL_OK")
</pallas_src>

<mosaic_0001>
module attributes {stable_mosaic.version = 11 : i64} {
  func.func @ffn_kernel(%arg0: i32, %arg1: memref<16x128xf32, #tpu.memory_space<vmem>>, %arg2: memref<128x1024xbf16, #tpu.memory_space<vmem>>, %arg3: memref<512x128xbf16, #tpu.memory_space<vmem>>, %arg4: memref<16x128xf32, #tpu.memory_space<vmem>>) attributes {dimension_semantics = [#tpu.dimension_semantics<parallel>], iteration_bounds = array<i64: 1>, scalar_prefetch = 0 : i64, scratch_operands = 0 : i64, tpu.core_type = #tpu.core_type<tc>, window_params = [{transform_indices = @transform_0, window_bounds = array<i64: 16, 128>}, {pipeline_mode = #tpu.pipeline_mode<synchronous>, transform_indices = @transform_1, window_bounds = array<i64: 128, 1024>}, {pipeline_mode = #tpu.pipeline_mode<synchronous>, transform_indices = @transform_2, window_bounds = array<i64: 512, 128>}, {transform_indices = @transform_3, window_bounds = array<i64: 16, 128>}]} {
    %c0 = arith.constant 0 : index
    %c0_0 = arith.constant 0 : index
    %0 = vector.load %arg1[%c0, %c0_0] : memref<16x128xf32, #tpu.memory_space<vmem>>, vector<16x128xf32>
    %1 = arith.truncf %0 : vector<16x128xf32> to vector<16x128xbf16>
    %c0_1 = arith.constant 0 : index
    %c0_2 = arith.constant 0 : index
    %2 = vector.load %arg2[%c0_1, %c0_2] : memref<128x1024xbf16, #tpu.memory_space<vmem>>, vector<128x1024xbf16>
    %cst = arith.constant dense<0.000000e+00> : vector<16x1024xf32>
    %3 = tpu.matmul %1, %2, %cst {dimension_numbers = #tpu.dot_dimension_numbers<[1], [0], [0], [1], [0, 0, 1, 1], [], []>} : vector<16x128xbf16>, vector<128x1024xbf16>, vector<16x1024xf32> -> vector<16x1024xf32>
    %4 = vector.extract_strided_slice %3 {offsets = [0, 0], sizes = [16, 512], strides = [1, 1]} : vector<16x1024xf32> to vector<16x512xf32>
    %5 = vector.extract_strided_slice %3 {offsets = [0, 512], sizes = [16, 512], strides = [1, 1]} : vector<16x1024xf32> to vector<16x512xf32>
    %cst_3 = arith.constant 0.000000e+00 : f32
    %6 = vector.broadcast %cst_3 : f32 to vector<16x512xf32>
    %7 = arith.subf %6, %4 : vector<16x512xf32>
    %8 = math.exp %7 : vector<16x512xf32>
    %cst_4 = arith.constant 1.000000e+00 : f32
    %9 = vector.broadcast %cst_4 : f32 to vector<16x512xf32>
    %10 = arith.addf %9, %8 : vector<16x512xf32>
    %11 = tpu.reciprocal %10 {approx = true} : vector<16x512xf32> -> vector<16x512xf32>
    %12 = arith.mulf %4, %11 : vector<16x512xf32>
    %13 = arith.mulf %12, %5 : vector<16x512xf32>
    %14 = arith.truncf %13 : vector<16x512xf32> to vector<16x512xbf16>
    %c0_5 = arith.constant 0 : index
    %c0_6 = arith.constant 0 : index
    %15 = vector.load %arg3[%c0_5, %c0_6] : memref<512x128xbf16, #tpu.memory_space<vmem>>, vector<512x128xbf16>
    %cst_7 = arith.constant dense<0.000000e+00> : vector<16x128xf32>
    %16 = tpu.matmul %14, %15, %cst_7 {dimension_numbers = #tpu.dot_dimension_numbers<[1], [0], [0], [1], [0, 0, 1, 1], [], []>} : vector<16x512xbf16>, vector<512x128xbf16>, vector<16x128xf32> -> vector<16x128xf32>
    %c0_8 = arith.constant 0 : index
    %c0_9 = arith.constant 0 : index
    %17 = vector.load %arg4[%c0_8, %c0_9] : memref<16x128xf32, #tpu.memory_space<vmem>>, vector<16x128xf32>
    tpu.vector_store %arg4[%c0_8, %c0_9], %16 {strides = array<i32>} : memref<16x128xf32, #tpu.memory_space<vmem>>, vector<16x128xf32>,
    return
  }
  func.func @transform_0(%arg0: i32) -> (i32, i32) {
    %c0_i32 = arith.constant 0 : i32
    %c0_i32_0 = arith.constant 0 : i32
    return %arg0, %c0_i32 : i32, i32
  }
  func.func @transform_1(%arg0: i32) -> (i32, i32) {
    %c0_i32 = arith.constant 0 : i32
    %c0_i32_0 = arith.constant 0 : i32
    %c0_i32_1 = arith.constant 0 : i32
    return %c0_i32, %c0_i32_0 : i32, i32
  }
  func.func @transform_2(%arg0: i32) -> (i32, i32) {
    %c0_i32 = arith.constant 0 : i32
    %c0_i32_0 = arith.constant 0 : i32
    %c0_i32_1 = arith.constant 0 : i32
    return %c0_i32, %c0_i32_0 : i32, i32
  }
  func.func @transform_3(%arg0: i32) -> (i32, i32) {
    %c0_i32 = arith.constant 0 : i32
    %c0_i32_0 = arith.constant 0 : i32
    return %arg0, %c0_i32 : i32, i32
  }
}

</mosaic_0001>

<bundles_post_ra>
// kernel: tpu_custom_call.1
= control target key start
LH: loop header
LB: loop body
LE: loop exit
PB: predicated region body
PF: predicated region fallthrough
CT: control target
= control target key end

     0   :  { %8 = vsyncpa [#allocation3], 0  ;;  %s1669_s0 = inlined_call_operand.hbm [shape: f32[16,128], index: 0, kind: input, shape index: {}]   ;;  %s1670_s1 = inlined_call_operand.hbm [shape: bf16[128,1024], index: 1, kind: input, shape index: {}]   ;;  %s1671_s2 = inlined_call_operand.hbm [shape: bf16[512,128], index: 2, kind: input, shape index: {}]   ;;  %s1672_s3 = inlined_call_operand.hbm [shape: f32[16,128], index: 3, kind: output, shape index: {}]  }
   0x1   :  { %9 = vsyncpa [#allocation6], 0  ;;  %s28_s14 = sshll.u32 %s1670_s1, 4  ;;  %s29_s14 = int_to_ptr.hbm [resolvable:$true] %s28_s14 }
   0x2   :  { %10 = vsyncpa [#allocation4], 0  ;;  %s1579_s15 = smov [#allocation5]   ;;  %s15_s19 = sshll.u32 %s1669_s0, 4  ;;  %s16_s19 = int_to_ptr.hbm [resolvable:$true] %s15_s19 }
   0x3   :  { %s30_s16 = sshll.u32 %s1579_s15, 4  ;;  %s1580_s20 = smov 512   ;;  %s31_s16 = int_to_ptr.vmem [resolvable:$true] %s30_s16 }
   0x4   :  { %s1581_s21 = smov 32   ;;  %s1582_s22 = smov [#allocation2]  }
   0x5   :  { %36 = dma.hbm_to_vmem [thread:$0]  %s29_s14, 8192, %s31_s16, [#allocation6], %s1580_s20, %s1580_s20, %s1581_s21  }
   0x6   :  { %s17_s23 = sshll.u32 %s1582_s22, 4  ;;  %s1583_s24 = smov 128   ;;  %s18_s23 = int_to_ptr.vmem [resolvable:$true] %s17_s23 }
   0x7   :  { %s1584_s25 = smov 8   ;;  %s41_s27 = sshll.u32 %s1671_s2, 4  ;;  %s42_s27 = int_to_ptr.hbm [resolvable:$true] %s41_s27 }
   0x8   :  { %23 = dma.hbm_to_vmem [thread:$0]  %s16_s19, 256, %s18_s23, [#allocation3], %s1583_s24, %s1583_s24, %s1584_s25  }
   0x9   :  { %s1585_s28 = smov [#allocation7]   ;;  %s1586_s29 = smov 64  }
   0xa   :  { %s43_s0 = sshll.u32 %s1585_s28, 4  ;;  %s1587_s30 = smov 4   ;;  %s44_s0 = int_to_ptr.vmem [resolvable:$true] %s43_s0 }
   0xb   :  { %49 = dma.hbm_to_vmem [thread:$0]  %s42_s27, 4096, %s44_s0, [#allocation6], %s1586_s29, %s1586_s29, %s1587_s30  }
   0xc   :  { %1573 = dma.done.wait [#allocation3], 256  }
   0xd   :  { %1574 = vsyncadd [#allocation3], 4294967040 }
   0xe   :  { %1575 = dma.done.wait [#allocation6], 12288  }
   0xf   :  { %1576 = vsyncadd [#allocation6], 4294955008  ;;  %v1181_v0 = vld [vmem:[#allocation5 + $0x1c0] sm:$0xf]  ;;  %v1395_v2 = vld [vmem:[#allocation5 + $0x1c4] sm:$0xf] }
  0x10   :  { %v1399_v1 = vld [vmem:[#allocation5 + $0x1dc] sm:$0xf0]  ;;  %v1183_v4 = vld [vmem:[#allocation5 + $0x1e0] sm:$0xf0]  ;;  %v1189_v5 = vld [vmem:[#allocation5 + $0x1c8] sm:$0xf] }
  0x11   :  { %v1182_v3 = vor.u32 %v1399_v1, %v1181_v0  ;;  %v1400_v6 = vld [vmem:[#allocation5 + $0x1e4] sm:$0xf0]  ;;  %v1186_v7 = vor.u32 %v1395_v2, %v1183_v4  ;;  %v1396_v9 = vld [vmem:[#allocation5 + $0x1cc] sm:$0xf]  ;;  %v1149_v11 = vld [vmem:[#allocation5 + $0x180] sm:$0xf] }
  0x12   :  { %v1190_v8 = vor.u32 %v1400_v6, %v1189_v5  ;;  %v1191_v10 = vld [vmem:[#allocation5 + $0x1e8] sm:$0xf0]  ;;  %v1391_v13 = vld [vmem:[#allocation5 + $0x19c] sm:$0xf0]  ;;  %v1387_v14 = vld [vmem:[#allocation5 + $0x184] sm:$0xf] }
  0x13   :  { %449 = vmatpush.bf16.msra.mxu0 %v1182_v3  ;;  %v1194_v12 = vor.u32 %v1396_v9, %v1191_v10  ;;  %v1151_v15 = vld [vmem:[#allocation5 + $0x1a0] sm:$0xf0]  ;;  %463 = vmatpush.bf16.msra.mxu1 %v1186_v7  ;;  %v1150_v16 = vor.u32 %v1391_v13, %v1149_v11  ;;  %v1157_v18 = vld [vmem:[#allocation5 + $0x188] sm:$0xf]  ;;  %v1388_v20 = vld [vmem:[#allocation5 + $0x18c] sm:$0xf] }
  0x14   :  { %477 = vmatpush.bf16.msra.mxu2 %v1190_v8  ;;  %v1154_v17 = vor.u32 %v1387_v14, %v1151_v15  ;;  %v1392_v19 = vld [vmem:[#allocation5 + $0x1a4] sm:$0xf0]  ;;  %v1159_v22 = vld [vmem:[#allocation5 + $0x1a8] sm:$0xf0]  ;;  %v1117_v23 = vld [vmem:[#allocation5 + $0x140] sm:$0xf] }
  0x15   :  { %491 = vmatpush.bf16.msra.mxu3 %v1194_v12  ;;  %v1158_v21 = vor.u32 %v1392_v19, %v1157_v18  ;;  %v1383_v24 = vld [vmem:[#allocation5 + $0x15c] sm:$0xf0]  ;;  %v1162_v25 = vor.u32 %v1388_v20, %v1159_v22  ;;  %v1379_v26 = vld [vmem:[#allocation5 + $0x144] sm:$0xf]  ;;  %v1125_v28 = vld [vmem:[#allocation5 + $0x148] sm:$0xf] }
  0x16   :  { %v1119_v27 = vld [vmem:[#allocation5 + $0x160] sm:$0xf0]  ;;  %v1118_v29 = vor.u32 %v1383_v24, %v1117_v23  ;;  %v1384_v30 = vld [vmem:[#allocation5 + $0x164] sm:$0xf0]  ;;  %v1380_v31 = vld [vmem:[#allocation5 + $0x14c] sm:$0xf] }
  0x17   :  { %450 = vmatpush.bf16.msra.mxu0 %v1150_v16  ;;  %v1127_v32 = vld [vmem:[#allocation5 + $0x168] sm:$0xf0]  ;;  %464 = vmatpush.bf16.msra.mxu1 %v1154_v17  ;;  %v1122_v33 = vor.u32 %v1379_v26, %v1119_v27  ;;  %v1126_v34 = vor.u32 %v1384_v30, %v1125_v28  ;;  %v1085_v35 = vld [vmem:[#allocation5 + $0x100] sm:$0xf]  ;;  %v1371_v37 = vld [vmem:[#allocation5 + $0x104] sm:$0xf] }
  0x18   :  { %478 = vmatpush.bf16.msra.mxu2 %v1158_v21  ;;  %v1375_v36 = vld [vmem:[#allocation5 + $0x11c] sm:$0xf0]  ;;  %v1130_v38 = vor.u32 %v1380_v31, %v1127_v32  ;;  %v1087_v39 = vld [vmem:[#allocation5 + $0x120] sm:$0xf0]  ;;  %v1093_v40 = vld [vmem:[#allocation5 + $0x108] sm:$0xf] }
  0x19   :  { %492 = vmatpush.bf16.msra.mxu3 %v1162_v25  ;;  %v1376_v41 = vld [vmem:[#allocation5 + $0x124] sm:$0xf0]  ;;  %v1372_v42 = vld [vmem:[#allocation5 + $0x10c] sm:$0xf]  ;;  %v1086_v44 = vor.u32 %v1375_v36, %v1085_v35  ;;  %v1090_v45 = vor.u32 %v1371_v37, %v1087_v39  ;;  %v1053_v47 = vld [vmem:[#allocation5 + $0xc0] sm:$0xf] }
  0x1a   :  { %v1095_v43 = vld [vmem:[#allocation5 + $0x128] sm:$0xf0]  ;;  %v1094_v46 = vor.u32 %v1376_v41, %v1093_v40  ;;  %v1367_v48 = vld [vmem:[#allocation5 + $0xdc] sm:$0xf0]  ;;  %v1363_v49 = vld [vmem:[#allocation5 + $0xc4] sm:$0xf] }
  0x1b   :  { %451 = vmatpush.bf16.msra.mxu0 %v1118_v29  ;;  %465 = vmatpush.bf16.msra.mxu1 %v1122_v33  ;;  %v1098_v50 = vor.u32 %v1372_v42, %v1095_v43  ;;  %v1055_v51 = vld [vmem:[#allocation5 + $0xe0] sm:$0xf0]  ;;  %v1061_v52 = vld [vmem:[#allocation5 + $0xc8] sm:$0xf]  ;;  %v1364_v54 = vld [vmem:[#allocation5 + $0xcc] sm:$0xf]  ;;  %v1054_v56 = vor.u32 %v1367_v48, %v1053_v47 }
  0x1c   :  { %479 = vmatpush.bf16.msra.mxu2 %v1126_v34  ;;  %v1368_v53 = vld [vmem:[#allocation5 + $0xe4] sm:$0xf0]  ;;  %v1063_v55 = vld [vmem:[#allocation5 + $0xe8] sm:$0xf0]  ;;  %v1058_v57 = vor.u32 %v1363_v49, %v1055_v51  ;;  %v1021_v59 = vld [vmem:[#allocation5 + $0x80] sm:$0xf] }
  0x1d   :  { %493 = vmatpush.bf16.msra.mxu3 %v1130_v38  ;;  %v1062_v58 = vor.u32 %v1368_v53, %v1061_v52  ;;  %v1359_v60 = vld [vmem:[#allocation5 + $0x9c] sm:$0xf0]  ;;  %v1355_v61 = vld [vmem:[#allocation5 + $0x84] sm:$0xf]  ;;  %v1066_v62 = vor.u32 %v1364_v54, %v1063_v55  ;;  %v1029_v0 = vld [vmem:[#allocation5 + $0x88] sm:$0xf] }
  0x1e   :  { %v1023_v63 = vld [vmem:[#allocation5 + $0xa0] sm:$0xf0]  ;;  %v1360_v1 = vld [vmem:[#allocation5 + $0xa4] sm:$0xf0]  ;;  %v1356_v2 = vld [vmem:[#allocation5 + $0x8c] sm:$0xf]  ;;  %v1022_v4 = vor.u32 %v1359_v60, %v1021_v59 }
  0x1f   :  { %452 = vmatpush.bf16.msra.mxu0 %v1086_v44  ;;  %466 = vmatpush.bf16.msra.mxu1 %v1090_v45  ;;  %v1031_v3 = vld [vmem:[#allocation5 + $0xa8] sm:$0xf0]  ;;  %v1026_v5 = vor.u32 %v1355_v61, %v1023_v63  ;;  %v1030_v6 = vor.u32 %v1360_v1, %v1029_v0  ;;  %v989_v7 = vld [vmem:[#allocation5 + $0x40] sm:$0xf]  ;;  %v1347_v9 = vld [vmem:[#allocation5 + $0x44] sm:$0xf] }
  0x20   :  { %480 = vmatpush.bf16.msra.mxu2 %v1094_v46  ;;  %v1351_v8 = vld [vmem:[#allocation5 + $0x5c] sm:$0xf0]  ;;  %v1034_v10 = vor.u32 %v1356_v2, %v1031_v3  ;;  %v991_v11 = vld [vmem:[#allocation5 + $0x60] sm:$0xf0]  ;;  %v997_v12 = vld [vmem:[#allocation5 + $0x48] sm:$0xf] }
  0x21   :  { %494 = vmatpush.bf16.msra.mxu3 %v1098_v50  ;;  %v1352_v13 = vld [vmem:[#allocation5 + $0x64] sm:$0xf0]  ;;  %v1348_v14 = vld [vmem:[#allocation5 + $0x4c] sm:$0xf]  ;;  %v990_v16 = vor.u32 %v1351_v8, %v989_v7  ;;  %v957_v17 = vld [vmem:[#allocation5] sm:$0xf]  ;;  %v994_v20 = vor.u32 %v1347_v9, %v991_v11 }
  0x22   :  { %v999_v15 = vld [vmem:[#allocation5 + $0x68] sm:$0xf0]  ;;  %v1343_v18 = vld [vmem:[#allocation5 + $0x1c] sm:$0xf0]  ;;  %v1339_v19 = vld [vmem:[#allocation5 + $0x4] sm:$0xf]  ;;  %v998_v21 = vor.u32 %v1352_v13, %v997_v12 }
  0x23   :  { %453 = vmatpush.bf16.msra.mxu0 %v1054_v56  ;;  %467 = vmatpush.bf16.msra.mxu1 %v1058_v57  ;;  %v959_v22 = vld [vmem:[#allocation5 + $0x20] sm:$0xf0]  ;;  %v965_v23 = vld [vmem:[#allocation5 + $0x8] sm:$0xf]  ;;  %v1002_v25 = vor.u32 %v1348_v14, %v999_v15  ;;  %v1340_v26 = vld [vmem:[#allocation5 + $0xc] sm:$0xf]  ;;  %v958_v32 = vor.u32 %v1343_v18, %v957_v17 }
  0x24   :  { %481 = vmatpush.bf16.msra.mxu2 %v1062_v58  ;;  %v1344_v24 = vld [vmem:[#allocation5 + $0x24] sm:$0xf0]  ;;  %v967_v27 = vld [vmem:[#allocation5 + $0x28] sm:$0xf0]  ;;  %v1197_v28 = vld [vmem:[#allocation5 + $0x1d0] sm:$0xf]  ;;  %v962_v36 = vor.u32 %v1339_v19, %v959_v22 }
  0x25   :  { %495 = vmatpush.bf16.msra.mxu3 %v1066_v62  ;;  %v1401_v29 = vld [vmem:[#allocation5 + $0x1ec] sm:$0xf0]  ;;  %v1397_v30 = vld [vmem:[#allocation5 + $0x1d4] sm:$0xf]  ;;  %v1205_v33 = vld [vmem:[#allocation5 + $0x1d8] sm:$0xf]  ;;  %v966_v37 = vor.u32 %v1344_v24, %v965_v23  ;;  %v970_v41 = vor.u32 %v1340_v26, %v967_v27 }
  0x26   :  { %v1199_v31 = vld [vmem:[#allocation5 + $0x1f0] sm:$0xf0]  ;;  %v1402_v34 = vld [vmem:[#allocation5 + $0x1f4] sm:$0xf0]  ;;  %v1398_v35 = vld [vmem:[#allocation5 + $0x1dc] sm:$0xf]  ;;  %v1198_v42 = vor.u32 %v1401_v29, %v1197_v28 }
  0x27   :  { %454 = vmatpush.bf16.msra.mxu0 %v1022_v4  ;;  %468 = vmatpush.bf16.msra.mxu1 %v1026_v5  ;;  %v1207_v38 = vld [vmem:[#allocation5 + $0x1f8] sm:$0xf0]  ;;  %v62_v39 = vld [vmem:[#allocation2] sm:$0xff]  ;;  %v1202_v43 = vor.u32 %v1397_v30, %v1199_v31  ;;  %v1206_v44 = vor.u32 %v1402_v34, %v1205_v33  ;;  %v1173_v51 = vld [vmem:[#allocation5 + $0x198] sm:$0xf]  ;;  %s1588_s2 = smov [#allocation8]  }
  0x28   :  { %482 = vmatpush.bf16.msra.mxu2 %v1030_v6  ;;  %v63_v40 = vld [vmem:[#allocation2 + $0x8] sm:$0xff]  ;;  %v1165_v45 = vld [vmem:[#allocation5 + $0x190] sm:$0xf]  ;;  %v1389_v47 = vld [vmem:[#allocation5 + $0x194] sm:$0xf]  ;;  %v1210_v48 = vor.u32 %v1398_v35, %v1207_v38  ;;  %s939_s4 = sshll.u32 %s1588_s2, 4  ;;  %s940_s4 = int_to_ptr.vmem [resolvable:$true] %s939_s4 }
  0x29   :  { %496 = vmatpush.bf16.msra.mxu3 %v1034_v10  ;;  %v1393_v46 = vld [vmem:[#allocation5 + $0x1ac] sm:$0xf0]  ;;  %v1621_v49 = vpack.c.bf16 %v63_v40, %v62_v39  ;;  %v1167_v50 = vld [vmem:[#allocation5 + $0x1b0] sm:$0xf0]  ;;  %v1394_v52 = vld [vmem:[#allocation5 + $0x1b4] sm:$0xf0] }
  0x2a   :  { %v1390_v53 = vld [vmem:[#allocation5 + $0x19c] sm:$0xf]  ;;  %v1166_v55 = vor.u32 %v1393_v46, %v1165_v45  ;;  %v1170_v56 = vor.u32 %v1389_v47, %v1167_v50  ;;  %v1174_v57 = vor.u32 %v1394_v52, %v1173_v51  ;;  %v1133_v58 = vld [vmem:[#allocation5 + $0x150] sm:$0xf]  ;;  %v1381_v60 = vld [vmem:[#allocation5 + $0x154] sm:$0xf] }
  0x2b   :  { %455 = vmatpush.bf16.msra.mxu0 %v990_v16  ;;  %469 = vmatpush.bf16.msra.mxu1 %v994_v20  ;;  %v1175_v54 = vld [vmem:[#allocation5 + $0x1b8] sm:$0xf0]  ;;  %v1385_v59 = vld [vmem:[#allocation5 + $0x16c] sm:$0xf0]  ;;  %v1135_v62 = vld [vmem:[#allocation5 + $0x170] sm:$0xf0] }
  0x2c   :  { %483 = vmatpush.bf16.msra.mxu2 %v998_v21  ;;  %v1178_v61 = vor.u32 %v1390_v53, %v1175_v54  ;;  %v1141_v63 = vld [vmem:[#allocation5 + $0x158] sm:$0xf]  ;;  %v1382_v1 = vld [vmem:[#allocation5 + $0x15c] sm:$0xf]  ;;  %v1134_v3 = vor.u32 %v1385_v59, %v1133_v58  ;;  %v1138_v4 = vor.u32 %v1381_v60, %v1135_v62  ;;  %v1101_v6 = vld [vmem:[#allocation5 + $0x110] sm:$0xf] }
  0x2d   :  { %497 = vmatpush.bf16.msra.mxu3 %v1002_v25  ;;  %v1386_v0 = vld [vmem:[#allocation5 + $0x174] sm:$0xf0]  ;;  %v1143_v2 = vld [vmem:[#allocation5 + $0x178] sm:$0xf0]  ;;  %v1377_v7 = vld [vmem:[#allocation5 + $0x12c] sm:$0xf0] }
  0x2e   :  { %v1142_v5 = vor.u32 %v1386_v0, %v1141_v63  ;;  %v1373_v8 = vld [vmem:[#allocation5 + $0x114] sm:$0xf]  ;;  %v1146_v9 = vor.u32 %v1382_v1, %v1143_v2  ;;  %v1109_v11 = vld [vmem:[#allocation5 + $0x118] sm:$0xf]  ;;  %v1374_v13 = vld [vmem:[#allocation5 + $0x11c] sm:$0xf]  ;;  %v1102_v15 = vor.u32 %v1377_v7, %v1101_v6 }
  0x2f   :  { %456 = vmatpush.bf16.msra.mxu0 %v958_v32  ;;  %470 = vmatpush.bf16.msra.mxu1 %v962_v36  ;;  %v1103_v10 = vld [vmem:[#allocation5 + $0x130] sm:$0xf0]  ;;  %v1378_v12 = vld [vmem:[#allocation5 + $0x134] sm:$0xf0]  ;;  %v1111_v14 = vld [vmem:[#allocation5 + $0x138] sm:$0xf0] }
  0x30   :  { %484 = vmatpush.bf16.msra.mxu2 %v966_v37  ;;  %v1106_v16 = vor.u32 %v1373_v8, %v1103_v10  ;;  %v1110_v17 = vor.u32 %v1378_v12, %v1109_v11  ;;  %v1069_v18 = vld [vmem:[#allocation5 + $0xd0] sm:$0xf]  ;;  %v1365_v20 = vld [vmem:[#allocation5 + $0xd4] sm:$0xf]  ;;  %v1114_v21 = vor.u32 %v1374_v13, %v1111_v14  ;;  %v1077_v23 = vld [vmem:[#allocation5 + $0xd8] sm:$0xf] }
  0x31   :  { %498 = vmatpush.bf16.msra.mxu3 %v970_v41  ;;  %v1369_v19 = vld [vmem:[#allocation5 + $0xec] sm:$0xf0]  ;;  %v1071_v22 = vld [vmem:[#allocation5 + $0xf0] sm:$0xf0]  ;;  %v1370_v24 = vld [vmem:[#allocation5 + $0xf4] sm:$0xf0] }
  0x32   :  { %457 = vmatmul.bf16.vlgmr.msra.gmra.mxu0 %v1621_v49  ;;  %471 = vmatmul.bf16.vlgmr.msra.gmra.mxu1 %v1621_v49  ;;  %v1366_v25 = vld [vmem:[#allocation5 + $0xdc] sm:$0xf]  ;;  %v1070_v27 = vor.u32 %v1369_v19, %v1069_v18  ;;  %v1074_v28 = vor.u32 %v1365_v20, %v1071_v22  ;;  %v1078_v29 = vor.u32 %v1370_v24, %v1077_v23  ;;  %v1037_v30 = vld [vmem:[#allocation5 + $0x90] sm:$0xf]  ;;  %v1357_v32 = vld [vmem:[#allocation5 + $0x94] sm:$0xf] }
  0x33   :  { %505 = vmatpush.bf16.msrb.mxu0 %v1198_v42  ;;  %519 = vmatpush.bf16.msrb.mxu1 %v1202_v43  ;;  %v1079_v26 = vld [vmem:[#allocation5 + $0xf8] sm:$0xf0]  ;;  %v1361_v31 = vld [vmem:[#allocation5 + $0xac] sm:$0xf0]  ;;  %v1039_v34 = vld [vmem:[#allocation5 + $0xb0] sm:$0xf0] }
  0x34   :  { %533 = vmatpush.bf16.msrb.mxu2 %v1206_v44  ;;  %499 = vmatmul.bf16.vlgmr.msra.gmra.mxu3 %v1621_v49  ;;  %v1082_v33 = vor.u32 %v1366_v25, %v1079_v26  ;;  %v1045_v35 = vld [vmem:[#allocation5 + $0x98] sm:$0xf]  ;;  %v1358_v37 = vld [vmem:[#allocation5 + $0x9c] sm:$0xf]  ;;  %v1038_v39 = vor.u32 %v1361_v31, %v1037_v30  ;;  %v1042_v40 = vor.u32 %v1357_v32, %v1039_v34  ;;  %v1005_v42 = vld [vmem:[#allocation5 + $0x50] sm:$0xf] }
  0x35   :  { %547 = vmatpush.bf16.msrb.mxu3 %v1210_v48  ;;  %485 = vmatmul.bf16.vlgmr.msra.gmra.mxu2 %v1621_v49  ;;  %v1362_v36 = vld [vmem:[#allocation5 + $0xb4] sm:$0xf0]  ;;  %v1047_v38 = vld [vmem:[#allocation5 + $0xb8] sm:$0xf0]  ;;  %v1353_v43 = vld [vmem:[#allocation5 + $0x6c] sm:$0xf0] }
  0x36   :  { %v1046_v41 = vor.u32 %v1362_v36, %v1045_v35  ;;  %v1349_v44 = vld [vmem:[#allocation5 + $0x54] sm:$0xf]  ;;  %v1050_v45 = vor.u32 %v1358_v37, %v1047_v38  ;;  %v1013_v47 = vld [vmem:[#allocation5 + $0x58] sm:$0xf]  ;;  %v1350_v50 = vld [vmem:[#allocation5 + $0x5c] sm:$0xf]  ;;  %v1006_v52 = vor.u32 %v1353_v43, %v1005_v42 }
  0x37   :  { %506 = vmatpush.bf16.msrb.mxu0 %v1166_v55  ;;  %520 = vmatpush.bf16.msrb.mxu1 %v1170_v56  ;;  %v1007_v46 = vld [vmem:[#allocation5 + $0x70] sm:$0xf0]  ;;  %v1354_v48 = vld [vmem:[#allocation5 + $0x74] sm:$0xf0]  ;;  %v1015_v51 = vld [vmem:[#allocation5 + $0x78] sm:$0xf0] }
  0x38   :  { %534 = vmatpush.bf16.msrb.mxu2 %v1174_v57  ;;  %v1010_v53 = vor.u32 %v1349_v44, %v1007_v46  ;;  %v1014_v54 = vor.u32 %v1354_v48, %v1013_v47  ;;  %v973_v55 = vld [vmem:[#allocation5 + $0x10] sm:$0xf]  ;;  %v1341_v57 = vld [vmem:[#allocation5 + $0x14] sm:$0xf]  ;;  %v1018_v58 = vor.u32 %v1350_v50, %v1015_v51  ;;  %v981_v60 = vld [vmem:[#allocation5 + $0x18] sm:$0xf] }
  0x39   :  { %548 = vmatpush.bf16.msrb.mxu3 %v1178_v61  ;;  %v1345_v56 = vld [vmem:[#allocation5 + $0x2c] sm:$0xf0]  ;;  %v975_v59 = vld [vmem:[#allocation5 + $0x30] sm:$0xf0]  ;;  %v1346_v61 = vld [vmem:[#allocation5 + $0x34] sm:$0xf0] }
  0x3a   :  { %v1342_v62 = vld [vmem:[#allocation5 + $0x1c] sm:$0xf]  ;;  %v974_v0 = vor.u32 %v1345_v56, %v973_v55  ;;  %v978_v1 = vor.u32 %v1341_v57, %v975_v59  ;;  %v982_v2 = vor.u32 %v1346_v61, %v981_v60  ;;  %v1409_v6 = vld [vmem:[#allocation7 + $0x30] sm:$0xff]  ;;  %v1408_v10 = vld [vmem:[#allocation7 + $0x28] sm:$0xff]  ;;  %s941_s7 = sshll.u32 %s1672_s3, 4  ;;  %s942_s7 = int_to_ptr.hbm [resolvable:$true] %s941_s7 }
  0x3b   :  { %507 = vmatpush.bf16.msrb.mxu0 %v1134_v3  ;;  %521 = vmatpush.bf16.msrb.mxu1 %v1138_v4  ;;  %v983_v63 = vld [vmem:[#allocation5 + $0x38] sm:$0xf0]  ;;  %v1417_v7 = vld [vmem:[#allocation7 + $0x70] sm:$0xff]  ;;  %v1416_v11 = vld [vmem:[#allocation7 + $0x68] sm:$0xff] }
  0x3c   :  { %535 = vmatpush.bf16.msrb.mxu2 %v1142_v5  ;;  %v986_v3 = vor.u32 %v1342_v62, %v983_v63  ;;  %v1410_v4 = vld [vmem:[#allocation7 + $0x38] sm:$0xff]  ;;  %v1425_v12 = vld [vmem:[#allocation7 + $0xb0] sm:$0xff]  ;;  %v1415_v14 = vld [vmem:[#allocation7 + $0x60] sm:$0xff] }
  0x3d   :  { %549 = vmatpush.bf16.msrb.mxu3 %v1146_v9  ;;  %v1418_v5 = vld [vmem:[#allocation7 + $0x78] sm:$0xff]  ;;  %v1433_v13 = vld [vmem:[#allocation7 + $0xf0] sm:$0xff]  ;;  %v1423_v19 = vld [vmem:[#allocation7 + $0xa0] sm:$0xff] }
  0x3e   :  { %v1426_v8 = vld [vmem:[#allocation7 + $0xb8] sm:$0xff]  ;;  %v1431_v20 = vld [vmem:[#allocation7 + $0xe0] sm:$0xff]  ;;  %v1405_v23 = vld [vmem:[#allocation7 + $0x10] sm:$0xff] }
  0x3f   :  { %508 = vmatpush.bf16.msrb.mxu0 %v1102_v15  ;;  %522 = vmatpush.bf16.msrb.mxu1 %v1106_v16  ;;  %v1434_v9 = vld [vmem:[#allocation7 + $0xf8] sm:$0xff]  ;;  %v1424_v15 = vld [vmem:[#allocation7 + $0xa8] sm:$0xff]  ;;  %v1413_v24 = vld [vmem:[#allocation7 + $0x50] sm:$0xff] }
  0x40   :  { %536 = vmatpush.bf16.msrb.mxu2 %v1110_v17  ;;  %v1432_v16 = vld [vmem:[#allocation7 + $0xe8] sm:$0xff]  ;;  %v1406_v17 = vld [vmem:[#allocation7 + $0x18] sm:$0xff]  ;;  %v1421_v32 = vld [vmem:[#allocation7 + $0x90] sm:$0xff] }
  0x41   :  { %550 = vmatpush.bf16.msrb.mxu3 %v1114_v21  ;;  %v1414_v18 = vld [vmem:[#allocation7 + $0x58] sm:$0xff]  ;;  %v1412_v30 = vld [vmem:[#allocation7 + $0x48] sm:$0xff] }
  0x42   :  { %v1422_v25 = vld [vmem:[#allocation7 + $0x98] sm:$0xff]  ;;  %v1420_v42 = vld [vmem:[#allocation7 + $0x88] sm:$0xff] }
  0x43   :  { %509 = vmatpush.bf16.msrb.mxu0 %v1070_v27  ;;  %523 = vmatpush.bf16.msrb.mxu1 %v1074_v28  ;;  %v1430_v26 = vld [vmem:[#allocation7 + $0xd8] sm:$0xff]  ;;  %v1428_v44 = vld [vmem:[#allocation7 + $0xc8] sm:$0xff] }
  0x44   :  { %537 = vmatpush.bf16.msrb.mxu2 %v1078_v29  ;;  %v1404_v29 = vld [vmem:[#allocation7 + $0x8] sm:$0xff] }
  0x45   :  { %551 = vmatpush.bf16.msrb.mxu3 %v1082_v33  ;;  %v1429_v33 = vld [vmem:[#allocation7 + $0xd0] sm:$0xff] }
  0x47   :  { %510 = vmatpush.bf16.msrb.mxu0 %v1038_v39  ;;  %524 = vmatpush.bf16.msrb.mxu1 %v1042_v40  ;;  %v1403_v40 = vld [vmem:[#allocation7] sm:$0xff] }
  0x48   :  { %538 = vmatpush.bf16.msrb.mxu2 %v1046_v41  ;;  %v1411_v41 = vld [vmem:[#allocation7 + $0x40] sm:$0xff] }
  0x49   :  { %552 = vmatpush.bf16.msrb.mxu3 %v1050_v45 }
  0x4b   :  { %511 = vmatpush.bf16.msrb.mxu0 %v1006_v52  ;;  %525 = vmatpush.bf16.msrb.mxu1 %v1010_v53  ;;  %v1419_v52 = vld [vmem:[#allocation7 + $0x80] sm:$0xff] }
  0x4c   :  { %539 = vmatpush.bf16.msrb.mxu2 %v1014_v54  ;;  %v1427_v53 = vld [vmem:[#allocation7 + $0xc0] sm:$0xff] }
  0x4d   :  { %553 = vmatpush.bf16.msrb.mxu3 %v1018_v58 }
  0x4f   :  { %512 = vmatpush.bf16.msrb.mxu0 %v974_v0  ;;  %526 = vmatpush.bf16.msrb.mxu1 %v978_v1 }
  0x50   :  { %540 = vmatpush.bf16.msrb.mxu2 %v982_v2 }
  0x51   :  { %554 = vmatpush.bf16.msrb.mxu3 %v986_v3 }
  0x52   :  { %513 = vmatmul.bf16.vlgmr.msrb.gmra.mxu0 %v1621_v49  ;;  %527 = vmatmul.bf16.vlgmr.msrb.gmra.mxu1 %v1621_v49 }
  0x53   :  { %541 = vmatmul.bf16.vlgmr.msrb.gmra.mxu2 %v1621_v49  ;;  %877 = vmatpush.bf16.msra.mxu0 %v1410_v4 }
  0x54   :  { %555 = vmatmul.bf16.vlgmr.msrb.gmra.mxu3 %v1621_v49  ;;  %891 = vmatpush.bf16.msra.mxu1 %v1418_v5  ;;  %v1407_v49 = vld [vmem:[#allocation7 + $0x20] sm:$0xff] }
  0x55   :  { %905 = vmatpush.bf16.msra.mxu2 %v1426_v8  ;;  %919 = vmatpush.bf16.msra.mxu3 %v1434_v9 }
  0x57   :  { %878 = vmatpush.bf16.msra.mxu0 %v1409_v6 }
  0x58   :  { %892 = vmatpush.bf16.msra.mxu1 %v1417_v7 }
  0x59   :  { %906 = vmatpush.bf16.msra.mxu2 %v1425_v12  ;;  %920 = vmatpush.bf16.msra.mxu3 %v1433_v13 }
  0x5b   :  { %879 = vmatpush.bf16.msra.mxu0 %v1408_v10 }
  0x5c   :  { %893 = vmatpush.bf16.msra.mxu1 %v1416_v11 }
  0x5d   :  { %907 = vmatpush.bf16.msra.mxu2 %v1424_v15  ;;  %921 = vmatpush.bf16.msra.mxu3 %v1432_v16 }
  0x5f   :  { %880 = vmatpush.bf16.msra.mxu0 %v1407_v49 }
  0x60   :  { %894 = vmatpush.bf16.msra.mxu1 %v1415_v14 }
  0x61   :  { %908 = vmatpush.bf16.msra.mxu2 %v1423_v19  ;;  %922 = vmatpush.bf16.msra.mxu3 %v1431_v20 }
  0x63   :  { %881 = vmatpush.bf16.msra.mxu0 %v1406_v17 }
  0x64   :  { %895 = vmatpush.bf16.msra.mxu1 %v1414_v18 }
  0x65   :  { %909 = vmatpush.bf16.msra.mxu2 %v1422_v25  ;;  %923 = vmatpush.bf16.msra.mxu3 %v1430_v26 }
  0x67   :  { %882 = vmatpush.bf16.msra.mxu0 %v1405_v23 }
  0x68   :  { %896 = vmatpush.bf16.msra.mxu1 %v1413_v24 }
  0x69   :  { %910 = vmatpush.bf16.msra.mxu2 %v1421_v32  ;;  %924 = vmatpush.bf16.msra.mxu3 %v1429_v33 }
  0x6b   :  { %883 = vmatpush.bf16.msra.mxu0 %v1404_v29 }
  0x6c   :  { %897 = vmatpush.bf16.msra.mxu1 %v1412_v30 }
  0x6d   :  { %911 = vmatpush.bf16.msra.mxu2 %v1420_v42  ;;  %925 = vmatpush.bf16.msra.mxu3 %v1428_v44 }
  0x6f   :  { %884 = vmatpush.bf16.msra.mxu0 %v1403_v40 }
  0x70   :  { %898 = vmatpush.bf16.msra.mxu1 %v1411_v41 }
  0x71   :  { %912 = vmatpush.bf16.msra.mxu2 %v1419_v52  ;;  %926 = vmatpush.bf16.msra.mxu3 %v1427_v53 }
  0xaf   :  { %v1631_v21 = vpop.f32.mrf.mxu0  ;;  %v1633_v22 = vpop.f32.mrf.mxu1 }
  0xb0   :  { %v561_v27 = vsub.f32 0.0, %v1631_v21  ;;  %v562_v28 = vsub.f32 0.0, %v1633_v22 }
  0xb2   :  { %v569_v34 = vmul.f32 1.442695, %v561_v27  ;;  %v571_v37 = vmul.f32 1.442695, %v562_v28 }
  0xb4   :  { %1445 = vpow2.f32 %v569_v34 }
  0xb5   :  { %1447 = vpow2.f32 %v571_v37 }
  0xb7   :  { %v1639_v35 = vpop.f32.mrf.mxu3  ;;  %v1641_v36 = vpop.f32.mrf.mxu0 }
  0xb8   :  { %v1637_v31 = vpop.f32.mrf.mxu2  ;;  %v565_v38 = vsub.f32 0.0, %v1641_v36  ;;  %v1644_v39 = vpop.f32.mrf.mxu1  ;;  %v564_v46 = vsub.f32 0.0, %v1639_v35 }
  0xb9   :  { %v566_v43 = vsub.f32 0.0, %v1644_v39  ;;  %v563_v45 = vsub.f32 0.0, %v1637_v31 }
  0xba   :  { %v577_v47 = vmul.f32 1.442695, %v565_v38  ;;  %v575_v54 = vmul.f32 1.442695, %v564_v46  ;;  %v1446_v58 = vpop.eup %1445 }
  0xbb   :  { %v579_v48 = vmul.f32 1.442695, %v566_v43  ;;  %v573_v50 = vmul.f32 1.442695, %v563_v45  ;;  %v1448_v60 = vpop.eup %1447  ;;  %v585_v62 = vadd.f32 1.0, %v1446_v58 }
  0xbc   :  { %1449 = vpow2.f32 %v577_v47  ;;  %v586_v0 = vadd.f32 1.0, %v1448_v60 }
  0xbd   :  { %1451 = vpow2.f32 %v579_v48 }
  0xbe   :  { %1453 = vpow2.f32 %v573_v50 }
  0xbf   :  { %v1652_v56 = vpop.f32.mrf.mxu3  ;;  %1455 = vpow2.f32 %v575_v54 }
  0xc0   :  { %v1649_v51 = vpop.f32.mrf.mxu2  ;;  %v568_v57 = vsub.f32 0.0, %v1652_v56 }
  0xc1   :  { %v567_v55 = vsub.f32 0.0, %v1649_v51 }
  0xc2   :  { %v583_v61 = vmul.f32 1.442695, %v568_v57  ;;  %v1450_v63 = vpop.eup %1449 }
  0xc3   :  { %v581_v59 = vmul.f32 1.442695, %v567_v55  ;;  %v1452_v1 = vpop.eup %1451  ;;  %v589_v2 = vadd.f32 1.0, %v1450_v63 }
  0xc4   :  { %v590_v3 = vadd.f32 1.0, %v1452_v1  ;;  %v1454_v4 = vpop.eup %1453 }
  0xc5   :  { %1457 = vpow2.f32 %v581_v59  ;;  %v1456_v5 = vpop.eup %1455  ;;  %v587_v7 = vadd.f32 1.0, %v1454_v4 }
  0xc6   :  { %1459 = vpow2.f32 %v583_v61  ;;  %v588_v9 = vadd.f32 1.0, %v1456_v5 }
  0xc7   :  { %1461 = vrcp.f32 %v585_v62 }
  0xc8   :  { %1463 = vrcp.f32 %v586_v0 }
  0xc9   :  { %1465 = vrcp.f32 %v589_v2 }
  0xca   :  { %1467 = vrcp.f32 %v590_v3 }
  0xcb   :  { %v1458_v6 = vpop.eup %1457  ;;  %1469 = vrcp.f32 %v587_v7 }
  0xcc   :  { %v1460_v8 = vpop.eup %1459  ;;  %v591_v11 = vadd.f32 1.0, %v1458_v6  ;;  %1471 = vrcp.f32 %v588_v9 }
  0xcd   :  { %v1462_v13 = vpop.eup %1461  ;;  %v592_v49 = vadd.f32 1.0, %v1460_v8 }
  0xce   :  { %v1464_v14 = vpop.eup %1463  ;;  %1473 = vrcp.f32 %v591_v11  ;;  %v601_v17 = vmul.f32 %v1462_v13, %v1631_v21 }
  0xcf   :  { %v514_v10 = vpop.f32.mrf.mxu0  ;;  %v528_v12 = vpop.f32.mrf.mxu1  ;;  %1475 = vrcp.f32 %v592_v49  ;;  %v602_v20 = vmul.f32 %v1464_v14, %v1633_v22 }
  0xd0   :  { %v1466_v15 = vpop.eup %1465  ;;  %v609_v27 = vmul.f32 %v601_v17, %v514_v10 }
  0xd1   :  { %v1468_v16 = vpop.eup %1467  ;;  %v605_v18 = vmul.f32 %v1466_v15, %v1641_v36  ;;  %v610_v32 = vmul.f32 %v602_v20, %v528_v12 }
  0xd2   :  { %v606_v23 = vmul.f32 %v1468_v16, %v1644_v39  ;;  %v1470_v26 = vpop.eup %1469 }
  0xd3   :  { %v1472_v30 = vpop.eup %1471  ;;  %v603_v36 = vmul.f32 %v1470_v26, %v1637_v31 }
  0xd4   :  { %v1474_v34 = vpop.eup %1473  ;;  %v604_v39 = vmul.f32 %v1472_v30, %v1639_v35 }
  0xd5   :  { %v1476_v38 = vpop.eup %1475  ;;  %v607_v22 = vmul.f32 %v1474_v34, %v1649_v51 }
  0xd6   :  { %v542_v19 = vpop.f32.mrf.mxu2  ;;  %v608_v40 = vmul.f32 %v1476_v38, %v1652_v56 }
  0xd7   :  { %v556_v24 = vpop.f32.mrf.mxu3  ;;  %v516_v25 = vpop.f32.mrf.mxu0  ;;  %v611_v42 = vmul.f32 %v603_v36, %v542_v19 }
  0xd8   :  { %v613_v28 = vmul.f32 %v605_v18, %v516_v25  ;;  %v530_v29 = vpop.f32.mrf.mxu1  ;;  %v612_v45 = vmul.f32 %v604_v39, %v556_v24 }
  0xd9   :  { %v614_v33 = vmul.f32 %v606_v23, %v530_v29 }
  0xda   :  { %v617_v37 = vpack.c.bf16 %v613_v28, %v609_v27 }
  0xdb   :  { %v618_v21 = vpack.c.bf16 %v614_v33, %v610_v32 }
  0xdc   :  { %885 = vmatmul.bf16.vlgmr.msra.gmra.mxu0 %v617_v37 }
  0xdd   :  { %899 = vmatmul.bf16.vlgmr.msra.gmra.mxu1 %v618_v21 }
  0xde   :  { %v544_v41 = vpop.f32.mrf.mxu2 }
  0xdf   :  { %v615_v43 = vmul.f32 %v607_v22, %v544_v41  ;;  %v558_v44 = vpop.f32.mrf.mxu3 }
  0xe0   :  { %v616_v46 = vmul.f32 %v608_v40, %v558_v44 }
  0xe1   :  { %v619_v47 = vpack.c.bf16 %v615_v43, %v611_v42 }
  0xe2   :  { %v620_v48 = vpack.c.bf16 %v616_v46, %v612_v45 }
  0xe3   :  { %913 = vmatmul.bf16.vlgmr.msra.gmra.mxu2 %v619_v47 }
  0xe4   :  { %927 = vmatmul.bf16.vlgmr.msra.gmra.mxu3 %v620_v48 }
 0x159   :  { %v886_v50 = vpop.f32.mrf.mxu0 }
 0x15a   :  { %v900_v52 = vpop.f32.mrf.mxu1 }
 0x15b   :  { %v901_v31 = vadd.f32 %v900_v52, %v886_v50 }
 0x161   :  { %v888_v35 = vpop.f32.mrf.mxu0 }
 0x162   :  { %v902_v57 = vpop.f32.mrf.mxu1 }
 0x163   :  { %v903_v56 = vadd.f32 %v902_v57, %v888_v35 }
 0x166   :  { %v914_v53 = vpop.f32.mrf.mxu2 }
 0x167   :  { %v915_v51 = vadd.f32 %v914_v53, %v901_v31  ;;  %v928_v54 = vpop.f32.mrf.mxu3 }
 0x169   :  { %v929_v55 = vadd.f32 %v928_v54, %v915_v51 }
 0x16b   :  { %933 = vst [vmem:[#allocation8] sm:$0xff] %v929_v55 }
 0x16e   :  { %v916_v58 = vpop.f32.mrf.mxu2 }
 0x16f   :  { %v917_v59 = vadd.f32 %v916_v58, %v903_v56  ;;  %v930_v60 = vpop.f32.mrf.mxu3 }
 0x171   :  { %v931_v61 = vadd.f32 %v930_v60, %v917_v59 }
 0x173   :  { %934 = vst [vmem:[#allocation8 + $0x8] sm:$0xff] %v931_v61 }
 0x174   :  { %947 = dma.vmem_to_hbm [thread:$0]  %s940_s4, 256, %s942_s7, [#allocation4], %s1583_s24, %s1583_s24, %s1584_s25  }
 0x175   :  { %1577 = dma.done.wait [#allocation4], 256  }
 0x176   :  { %1578 = vsyncadd [#allocation4], 4294967040 }
 0x177   :  { %952 = vsyncpa [#allocation3], 1 }
 0x178   :  { %953 = vsyncpa [#allocation6], 1 }
 0x179   :  { %954 = vsyncpa [#allocation4], 1 }

</bundles_post_ra>
